<compile_context>
chip_gen: v5e
topology: v5e:2x2
jax: 0.10.0
libtpu: 0.0.40
codegen_flags: <defaults>
</compile_context>

<pallas_src>
import functools

import numpy as np
import jax
import jax.numpy as jnp
from jax import lax
from jax.experimental import pallas as pl
from jax.experimental.pallas import tpu as pltpu

_LOGIT_04 = float(np.log(0.4 / 0.6))   # sigmoid(x) >= 0.4  <=>  x >= log(0.4/0.6)
_MASK_INPUT_BUDGET = 24 * 1024 * 1024  # double-buffered mask-kernel inputs
_MASK_VMEM_LIMIT = 40 * 1024 * 1024    # raised scoped-VMEM limit (safe on all gens)


def _round_up(x, m):
    return ((x + m - 1) // m) * m


# ----------------------------------------------------------------------------
# Pallas kernels
# ----------------------------------------------------------------------------
def _focal_loss_kernel(logits_ref, classes_ref, out_ref):
    """One (TR, C) row tile per grid step; writes a per-block partial sum."""
    x = logits_ref[...].astype(jnp.float32)              # (TR, C)
    cls = classes_ref[...]                                # (TR, 1) int32; -1 = pad row
    col = lax.broadcasted_iota(jnp.int32, x.shape, 1)     # (TR, C)
    t = (col == cls).astype(jnp.float32)                  # in-kernel one-hot labels
    valid = (cls >= 0).astype(jnp.float32)                # (TR, 1) mask for pad rows

    # shared exp(-|x|) for both sigmoid and BCE-with-logits (one EUP exp)
    e = jnp.exp(-jnp.abs(x))
    inv = pl.reciprocal(1.0 + e, approx=True)             # EUP recip
    p = jnp.where(x >= 0.0, inv, e * inv)                 # sigmoid(x)
    ce = jnp.maximum(x, 0.0) - x * t + jnp.log1p(e)       # BCE with logits
    p_t = p * t + (1.0 - p) * (1.0 - t)
    one_minus_pt = 1.0 - p_t
    alpha_t = 0.25 * t + 0.75 * (1.0 - t)                 # alpha = 0.25, gamma = 2
    loss = alpha_t * ce * one_minus_pt * one_minus_pt

    out_ref[...] = jnp.zeros((1, 1), jnp.float32) + jnp.sum(loss * valid)


def _mask_loss_kernel(pm_ref, tm_ref, sc_ref,             # (TK,S),(TK,S),(TK,1) tiles
                      dice_ref, bce_ref, obj_ref,         # (1,1) per-block partials
                      *, k_valid, tk):
    """One (TK, S) tile of pre-gathered matched instances per grid step."""
    i = pl.program_id(0)
    x = pm_ref[...].astype(jnp.float32)       # (TK, S) mask logits
    t = tm_ref[...].astype(jnp.float32)       # (TK, S) binary GT masks (bf16 in HBM)
    z = sc_ref[...].astype(jnp.float32)       # (TK, 1) objectness logits

    # padded rows (k >= K) are not neutral -> mask them out
    row = i * tk + lax.broadcasted_iota(jnp.int32, (tk, 1), 0)
    valid = (row < k_valid).astype(jnp.float32)            # (TK, 1)

    # shared exp(-|x|) for sigmoid + pixel BCE
    e = jnp.exp(-jnp.abs(x))
    inv = pl.reciprocal(1.0 + e, approx=True)
    s = jnp.where(x >= 0.0, inv, e * inv)      # sigmoid(x)

    # compute_mask_iou (torch.no_grad in the reference; forward value identical).
    # Binarization done on the logit (exact), GT masks are binary so sum(t)
    # serves both the IoU union and the dice denominator.
    b = (x >= _LOGIT_04).astype(jnp.float32)                     # sigmoid(x) >= 0.4
    sum_t = jnp.sum(t, axis=-1, keepdims=True)                   # (TK, 1)
    sum_b = jnp.sum(b, axis=-1, keepdims=True)
    inter = jnp.sum(b * t, axis=-1, keepdims=True)
    iou = inter / (sum_t + sum_b - inter + 1e-6)

    # dice loss (per instance; caller divides the sum by num_instances)
    sum_st = jnp.sum(s * t, axis=-1, keepdims=True)
    sum_ss = jnp.sum(s * s, axis=-1, keepdims=True)
    dice = 1.0 - 2.0 * sum_st / (sum_ss + sum_t + 1e-4)

    # pixel BCE-with-logits, summed per row (mean taken by caller)
    bce = jnp.sum(jnp.maximum(x, 0.0) - x * t + jnp.log1p(e), axis=-1, keepdims=True)

    # objectness BCE-with-logits vs. mask IoU (mean over K taken by caller)
    obj = jnp.maximum(z, 0.0) - z * iou + jnp.log1p(jnp.exp(-jnp.abs(z)))

    zero = jnp.zeros((1, 1), jnp.float32)
    dice_ref[...] = zero + jnp.sum(dice * valid)
    bce_ref[...] = zero + jnp.sum(bce * valid)
    obj_ref[...] = zero + jnp.sum(obj * valid)


# ----------------------------------------------------------------------------
# pallas_call wrappers
# ----------------------------------------------------------------------------
def _focal_pallas(logits_2d, classes_2d, block_rows):
    r_pad, c = logits_2d.shape
    nb = r_pad // block_rows
    partials = pl.pallas_call(
        _focal_loss_kernel,
        out_shape=jax.ShapeDtypeStruct((nb, 1), jnp.float32),
        grid_spec=pltpu.PrefetchScalarGridSpec(
            num_scalar_prefetch=0,
            grid=(nb,),
            in_specs=[pl.BlockSpec((block_rows, c), lambda i: (i, 0)),
                      pl.BlockSpec((block_rows, 1), lambda i: (i, 0))],
            out_specs=pl.BlockSpec((1, 1), lambda i: (i, 0))),
        compiler_params=pltpu.CompilerParams(
            dimension_semantics=("parallel",)),
    )(logits_2d, classes_2d)
    return jnp.sum(partials)


def _mask_pallas(pm, tm, sc, k_valid, mask_rows):
    k_pad, s = pm.shape
    nb = k_pad // mask_rows
    kernel = functools.partial(_mask_loss_kernel, k_valid=k_valid, tk=mask_rows)
    partials = pl.pallas_call(
        kernel,
        out_shape=tuple(jax.ShapeDtypeStruct((nb, 1), jnp.float32) for _ in range(3)),
        grid_spec=pltpu.PrefetchScalarGridSpec(
            num_scalar_prefetch=0,
            grid=(nb,),
            in_specs=[pl.BlockSpec((mask_rows, s), lambda i: (i, 0)),
                      pl.BlockSpec((mask_rows, s), lambda i: (i, 0)),
                      pl.BlockSpec((mask_rows, 1), lambda i: (i, 0))],
            out_specs=tuple(pl.BlockSpec((1, 1), lambda i: (i, 0))
                            for _ in range(3))),
        compiler_params=pltpu.CompilerParams(
            dimension_semantics=("parallel",),
            vmem_limit_bytes=_MASK_VMEM_LIMIT),
    )(pm, tm, sc)
    return jnp.sum(partials[0]), jnp.sum(partials[1]), jnp.sum(partials[2])


def _focal_prep(pred_logits, classes_pad, block_rows):
    b, n, c = pred_logits.shape
    r = b * n
    r_pad = classes_pad.shape[0]
    logits = pred_logits.reshape(r, c)
    if r_pad != r:
        logits = jnp.pad(logits, ((0, r_pad - r), (0, 0)))   # pad rows masked in-kernel
    return _focal_pallas(logits, classes_pad, block_rows)


@functools.partial(jax.jit, static_argnames=("block_rows", "mask_rows", "k_valid"))
def _loss_sums(pred_logits, pred_masks, pred_scores, tgt_masks_bf16, classes_pad,
               src_rows_pad, mix_tgt_pad, *, block_rows, mask_rows, k_valid):
    """Single device program: focal + mask Pallas kernels + XLA row gathers."""
    b, n, _ = pred_logits.shape
    h, w = pred_masks.shape[-2:]
    r, s = b * n, h * w
    focal = _focal_prep(pred_logits, classes_pad, block_rows)
    # pre-gather matched rows (XLA gather); padded indices point at row 0 and
    # are masked in-kernel via the static K
    pm = pred_masks.reshape(r, s)[src_rows_pad]                            # (K_pad, S)
    tm = tgt_masks_bf16.reshape(tgt_masks_bf16.shape[0], s)[mix_tgt_pad]   # (K_pad, S) bf16
    sc = pred_scores.reshape(r, 1)[src_rows_pad]                           # (K_pad, 1)
    dice, bce, obj = _mask_pallas(pm, tm, sc, k_valid, mask_rows)
    return focal, dice, bce, obj


@functools.partial(jax.jit, static_argnames=("block_rows",))
def _focal_sum_only(pred_logits, classes_pad, *, block_rows):
    return _focal_prep(pred_logits, classes_pad, block_rows)


# ----------------------------------------------------------------------------
# Criterion (glue: index bookkeeping on host; loss math in the Pallas kernels)
# ----------------------------------------------------------------------------
class SparseInstCriterionPallas:
    def __init__(self, num_classes, weight_dict):
        self.num_classes = num_classes
        self.weight_dict = weight_dict

    def __call__(self, outputs, targets, indices):
        pred_logits = outputs['pred_logits']     # (B, N, C) class logits
        pred_masks = outputs['pred_masks']       # (B, N, H, W) mask logits
        pred_scores = outputs['pred_scores']     # (B, N, 1) objectness logits

        B, N, C = pred_logits.shape
        H, W = pred_masks.shape[-2:]
        S = H * W
        R = B * N

        # TODO(synk): distributed all_reduce of num_instances omitted (single host).
        num_instances = float(max(sum(int(t['labels'].shape[0]) for t in targets), 1))

        src_list = [np.asarray(src, np.int32) for src, _ in indices]
        tgt_list = [np.asarray(tgt, np.int32) for _, tgt in indices]
        K = int(sum(len(s_) for s_ in src_list))

        # ---- loss_labels index bookkeeping (host side, tiny) ----
        target_classes = np.full((R,), self.num_classes, np.int32)
        if K > 0:
            batch_idx = np.concatenate([np.full(len(s_), i, np.int32)
                                        for i, s_ in enumerate(src_list)])
            src_idx = np.concatenate(src_list)
            tgt_idx = np.concatenate(tgt_list)
            src_rows = batch_idx * N + src_idx                       # rows of (B*N, ·)
            target_classes_o = np.concatenate([
                np.asarray(t['labels'], np.int32)[tg]
                for t, tg in zip(targets, tgt_list)])
            target_classes[src_rows] = target_classes_o

        # focal row tile: big tiles amortize per-step overhead; pad class id -1
        # is masked inside the kernel (focal(0, 0) != 0, so padding is not neutral)
        TR = min(1024, _round_up(max(R, 8), 8))
        R_pad = _round_up(R, TR)
        classes_pad = np.full((R_pad, 1), -1, np.int32)
        classes_pad[:R, 0] = target_classes
        classes_pad = jnp.asarray(classes_pad)

        if K == 0:
            focal_sum = _focal_sum_only(pred_logits, classes_pad, block_rows=TR)
            zero = jnp.zeros((), jnp.float32)
            losses = {'loss_ce': focal_sum / num_instances,
                      'loss_dice': zero, 'loss_mask': zero, 'loss_objectness': zero}
            return {k: v * self.weight_dict[k] for k, v in losses.items()}

        # ---- loss_masks index bookkeeping ----
        # TODO(synk): the reference bilinearly resizes GT masks (F.interpolate) to
        # the pred-mask resolution; GT here is generated at that resolution, so
        # the resize is the identity (and the masks stay exactly binary).
        all_tgt_masks = jnp.concatenate(
            [jnp.asarray(t['masks']).reshape(-1, H, W) for t in targets],
            axis=0).astype(jnp.bfloat16)                 # binary -> exact in bf16
        num_masks = [int(t['masks'].shape[0]) for t in targets]
        cum = np.cumsum([0] + num_masks[:-1])
        mix_tgt_idx = np.concatenate([np.full(len(tg), off, np.int32)
                                      for off, tg in zip(cum, tgt_list)]) + tgt_idx

        # mask tile: batch TK instances per grid step, sized against a VMEM budget
        bytes_per_row = 2 * S * (4 + 2) + 2 * 4       # pm f32 + tm bf16 + score, 2 buffers
        tk_cap = max(8, (_MASK_INPUT_BUDGET // max(bytes_per_row, 1)) // 8 * 8)
        TK = int(min(128, tk_cap, _round_up(max(K, 8), 8)))
        K_pad = _round_up(K, TK)

        src_rows_pad = np.zeros((K_pad,), np.int32)
        src_rows_pad[:K] = src_rows
        mix_tgt_pad = np.zeros((K_pad,), np.int32)
        mix_tgt_pad[:K] = mix_tgt_idx

        focal_sum, dice_sum, bce_sum, obj_sum = _loss_sums(
            pred_logits, pred_masks, pred_scores, all_tgt_masks, classes_pad,
            jnp.asarray(src_rows_pad), jnp.asarray(mix_tgt_pad),
            block_rows=TR, mask_rows=TK, k_valid=K)

        losses = {
            'loss_ce': focal_sum / num_instances,
            'loss_dice': dice_sum / num_instances,     # dice_loss(...) / num_instances
            'loss_mask': bce_sum / (K * S),            # pixel BCE mean
            'loss_objectness': obj_sum / K,            # objectness BCE mean
        }
        return {k: v * self.weight_dict[k] for k, v in losses.items()}


# ----------------------------------------------------------------------------
# pure-JAX reference of the same forward math (self-check only)
# ----------------------------------------------------------------------------
def _reference_losses(outputs, targets, indices, num_classes, weight_dict):
    pred_logits = outputs['pred_logits']
    pred_masks = outputs['pred_masks']
    pred_scores = outputs['pred_scores']
    B, N, C = pred_logits.shape
    H, W = pred_masks.shape[-2:]
    S = H * W
    num_instances = float(max(sum(int(t['labels'].shape[0]) for t in targets), 1))

    batch_idx = np.concatenate([np.full(len(src), i, np.int64)
                                for i, (src, _) in enumerate(indices)])
    src_idx = np.concatenate([np.asarray(src, np.int64) for src, _ in indices])
    tgt_idx = np.concatenate([np.asarray(tgt, np.int64) for _, tgt in indices])

    target_classes = np.full((B, N), num_classes, np.int64)
    target_classes_o = np.concatenate([np.asarray(t['labels'], np.int64)[tg]
                                       for t, (_, tg) in zip(targets, indices)])
    target_classes[batch_idx, src_idx] = target_classes_o
    tc = target_classes.reshape(-1)
    labels = np.zeros((B * N, C), np.float32)
    pos = np.nonzero(tc != num_classes)[0]
    labels[pos, tc[pos]] = 1.0

    x = jnp.asarray(pred_logits, jnp.float32).reshape(B * N, C)
    t = jnp.asarray(labels)
    p = jax.nn.sigmoid(x)
    ce = jnp.maximum(x, 0.0) - x * t + jnp.log1p(jnp.exp(-jnp.abs(x)))
    p_t = p * t + (1.0 - p) * (1.0 - t)
    focal = jnp.sum((0.25 * t + 0.75 * (1.0 - t)) * ce * (1.0 - p_t) ** 2)
    loss_ce = focal / num_instances

    src_m = jnp.asarray(pred_masks, jnp.float32)[batch_idx, src_idx].reshape(-1, S)
    all_t = jnp.concatenate([jnp.asarray(tt['masks'], jnp.float32).reshape(-1, H, W)
                             for tt in targets], axis=0)
    num_masks = [int(tt['masks'].shape[0]) for tt in targets]
    cum = np.cumsum([0] + num_masks[:-1])
    offs = np.concatenate([np.full(len(tg), o, np.int64)
                           for o, (_, tg) in zip(cum, indices)])
    tgt_m = all_t[offs + tgt_idx].reshape(-1, S)
    z = jnp.asarray(pred_scores, jnp.float32)[batch_idx, src_idx].reshape(-1)

    s = jax.nn.sigmoid(src_m)
    b = (s >= 0.4).astype(jnp.float32)
    tb = (tgt_m > 0.5).astype(jnp.float32)
    inter = (b * tb).sum(-1)
    union = tb.sum(-1) + b.sum(-1) - inter
    iou = inter / (union + 1e-6)
    dice = 1.0 - 2.0 * (s * tgt_m).sum(1) / ((s * s).sum(-1) + (tgt_m * tgt_m).sum(-1) + 1e-4)
    loss_dice = dice.sum() / num_instances
    bce = jnp.maximum(src_m, 0.0) - src_m * tgt_m + jnp.log1p(jnp.exp(-jnp.abs(src_m)))
    loss_mask = bce.mean()
    obj = jnp.maximum(z, 0.0) - z * iou + jnp.log1p(jnp.exp(-jnp.abs(z)))
    loss_obj = obj.mean()

    losses = {'loss_ce': loss_ce, 'loss_dice': loss_dice,
              'loss_mask': loss_mask, 'loss_objectness': loss_obj}
    return {k: float(v) * weight_dict[k] for k, v in losses.items()}


# ----------------------------------------------------------------------------
if __name__ == "__main__":
    key = jax.random.PRNGKey(0)
    B, N, C, H, W = 2, 8, 4, 16, 16      # batch, #queries, #classes, mask size

    k1, k2, k3, k4, k5, k6, k7 = jax.random.split(key, 7)
    pred_logits = jax.random.normal(k1, (B, N, C), jnp.float32)
    pred_masks = jax.random.normal(k2, (B, N, H, W), jnp.float32)
    pred_scores = jax.random.normal(k3, (B, N, 1), jnp.float32)

    # synthetic ground truth: 3 instances per image (binary masks, class ids)
    num_gt = [3, 3]
    labels0 = np.asarray(jax.random.randint(k4, (num_gt[0],), 0, C))
    labels1 = np.asarray(jax.random.randint(k5, (num_gt[1],), 0, C))
    masks0 = (jax.random.uniform(k6, (num_gt[0], H, W)) > 0.5).astype(jnp.float32)
    masks1 = (jax.random.uniform(k7, (num_gt[1], H, W)) > 0.5).astype(jnp.float32)
    targets = [{'labels': labels0, 'masks': masks0},
               {'labels': labels1, 'masks': masks1}]

    # matcher output (external self.matcher): per-image (src query idx, tgt gt idx)
    indices = [(np.array([1, 4, 6], np.int32), np.array([0, 2, 1], np.int32)),
               (np.array([0, 3, 7], np.int32), np.array([2, 0, 1], np.int32))]

    # cfg.MODEL.SPARSE_INST.LOSS weights (SparseInst defaults), deterministic
    weight_dict = {'loss_ce': 2.0, 'loss_mask': 5.0,
                   'loss_dice': 2.0, 'loss_objectness': 1.0}

    outputs = {'pred_logits': pred_logits,
               'pred_masks': pred_masks,
               'pred_scores': pred_scores}

    crit = SparseInstCriterionPallas(num_classes=C, weight_dict=weight_dict)
    losses = crit(outputs, targets, indices)
    losses = {k: float(jax.block_until_ready(v)) for k, v in losses.items()}

    # self-check against a pure-JAX reference of the same math
    # (tolerance covers the in-kernel approx reciprocal used for sigmoid)
    ref = _reference_losses(outputs, targets, indices, C, weight_dict)
    for k in losses:
        assert abs(losses[k] - ref[k]) <= 5e-3 * (abs(ref[k]) + 1.0), (k, losses[k], ref[k])

    print("KERNEL_OK")
</pallas_src>

<mosaic_0001>
module attributes {stable_mosaic.version = 11 : i64} {
  func.func @_focal_loss_kernel(%arg0: i32, %arg1: memref<16x4xf32, #tpu.memory_space<vmem>>, %arg2: memref<16x1xi32, #tpu.memory_space<vmem>>, %arg3: memref<1x1xf32, #tpu.memory_space<vmem>>) attributes {dimension_semantics = [#tpu.dimension_semantics<parallel>], iteration_bounds = array<i64: 1>, scalar_prefetch = 0 : i64, scratch_operands = 0 : i64, tpu.core_type = #tpu.core_type<tc>, window_params = [{transform_indices = @transform_0, window_bounds = array<i64: 16, 4>}, {transform_indices = @transform_1, window_bounds = array<i64: 16, 1>}, {transform_indices = @transform_2, window_bounds = array<i64: 1, 1>}]} {
    %c0 = arith.constant 0 : index
    %c0_0 = arith.constant 0 : index
    %0 = vector.load %arg1[%c0, %c0_0] : memref<16x4xf32, #tpu.memory_space<vmem>>, vector<16x4xf32>
    %c0_1 = arith.constant 0 : index
    %c0_2 = arith.constant 0 : index
    %1 = vector.load %arg2[%c0_1, %c0_2] : memref<16x1xi32, #tpu.memory_space<vmem>>, vector<16x1xi32>
    %2 = tpu.iota {dimensions = array<i32: 1>} : vector<16x4xi32>
    %3 = vector.broadcast %1 : vector<16x1xi32> to vector<16x4xi32>
    %4 = arith.cmpi eq, %2, %3 : vector<16x4xi32>
    %5 = arith.extui %4 : vector<16x4xi1> to vector<16x4xi32>
    %6 = arith.sitofp %5 : vector<16x4xi32> to vector<16x4xf32>
    %c0_i32 = arith.constant 0 : i32
    %7 = vector.broadcast %c0_i32 : i32 to vector<16x1xi32>
    %8 = arith.cmpi sge, %1, %7 : vector<16x1xi32>
    %9 = arith.extui %8 : vector<16x1xi1> to vector<16x1xi32>
    %10 = arith.sitofp %9 : vector<16x1xi32> to vector<16x1xf32>
    %11 = math.absf %0 : vector<16x4xf32>
    %cst = arith.constant 0.000000e+00 : f32
    %12 = vector.broadcast %cst : f32 to vector<16x4xf32>
    %13 = arith.subf %12, %11 : vector<16x4xf32>
    %14 = math.exp %13 : vector<16x4xf32>
    %cst_3 = arith.constant 1.000000e+00 : f32
    %15 = vector.broadcast %cst_3 : f32 to vector<16x4xf32>
    %16 = arith.addf %15, %14 : vector<16x4xf32>
    %17 = tpu.reciprocal %16 {approx = true} : vector<16x4xf32> -> vector<16x4xf32>
    %cst_4 = arith.constant 0.000000e+00 : f32
    %18 = vector.broadcast %cst_4 : f32 to vector<16x4xf32>
    %19 = arith.cmpf oge, %0, %18 : vector<16x4xf32>
    %20 = arith.mulf %14, %17 : vector<16x4xf32>
    %21 = arith.select %19, %17, %20 : vector<16x4xi1>, vector<16x4xf32>
    %cst_5 = arith.constant 0.000000e+00 : f32
    %22 = vector.broadcast %cst_5 : f32 to vector<16x4xf32>
    %23 = arith.maximumf %0, %22 : vector<16x4xf32>
    %24 = arith.mulf %0, %6 : vector<16x4xf32>
    %25 = arith.subf %23, %24 : vector<16x4xf32>
    %26 = math.log1p %14 : vector<16x4xf32>
    %27 = arith.addf %25, %26 : vector<16x4xf32>
    %28 = arith.mulf %21, %6 : vector<16x4xf32>
    %cst_6 = arith.constant 1.000000e+00 : f32
    %29 = vector.broadcast %cst_6 : f32 to vector<16x4xf32>
    %30 = arith.subf %29, %21 : vector<16x4xf32>
    %cst_7 = arith.constant 1.000000e+00 : f32
    %31 = vector.broadcast %cst_7 : f32 to vector<16x4xf32>
    %32 = arith.subf %31, %6 : vector<16x4xf32>
    %33 = arith.mulf %30, %32 : vector<16x4xf32>
    %34 = arith.addf %28, %33 : vector<16x4xf32>
    %cst_8 = arith.constant 1.000000e+00 : f32
    %35 = vector.broadcast %cst_8 : f32 to vector<16x4xf32>
    %36 = arith.subf %35, %34 : vector<16x4xf32>
    %cst_9 = arith.constant 2.500000e-01 : f32
    %37 = vector.broadcast %cst_9 : f32 to vector<16x4xf32>
    %38 = arith.mulf %37, %6 : vector<16x4xf32>
    %cst_10 = arith.constant 1.000000e+00 : f32
    %39 = vector.broadcast %cst_10 : f32 to vector<16x4xf32>
    %40 = arith.subf %39, %6 : vector<16x4xf32>
    %cst_11 = arith.constant 7.500000e-01 : f32
    %41 = vector.broadcast %cst_11 : f32 to vector<16x4xf32>
    %42 = arith.mulf %41, %40 : vector<16x4xf32>
    %43 = arith.addf %38, %42 : vector<16x4xf32>
    %44 = arith.mulf %43, %27 : vector<16x4xf32>
    %45 = arith.mulf %44, %36 : vector<16x4xf32>
    %46 = arith.mulf %45, %36 : vector<16x4xf32>
    %cst_12 = arith.constant 0.000000e+00 : f32
    %47 = vector.broadcast %cst_12 : f32 to vector<1x1xf32>
    %48 = vector.broadcast %10 : vector<16x1xf32> to vector<16x4xf32>
    %49 = arith.mulf %46, %48 : vector<16x4xf32>
    %50 = vector.shape_cast %49 : vector<16x4xf32> to vector<1x16x4xf32>
    %cst_13 = arith.constant dense<0.000000e+00> : vector<1xf32>
    %51 = vector.multi_reduction <add>, %50, %cst_13 [1, 2] : vector<1x16x4xf32> to vector<1xf32>
    %52 = vector.shape_cast %51 : vector<1xf32> to vector<1x1x1xf32>
    %53 = vector.extract %52[0, 0, 0] : f32 from vector<1x1x1xf32>
    %54 = vector.broadcast %53 : f32 to vector<1x1xf32>
    %55 = arith.addf %47, %54 : vector<1x1xf32>
    %c0_14 = arith.constant 0 : index
    %c0_15 = arith.constant 0 : index
    %56 = vector.load %arg3[%c0_14, %c0_15] : memref<1x1xf32, #tpu.memory_space<vmem>>, vector<1x1xf32>
    tpu.vector_store %arg3[%c0_14, %c0_15], %55 {strides = array<i32>} : memref<1x1xf32, #tpu.memory_space<vmem>>, vector<1x1xf32>,
    return
  }
  func.func @transform_0(%arg0: i32) -> (i32, i32) {
    %c0_i32 = arith.constant 0 : i32
    %c0_i32_0 = arith.constant 0 : i32
    return %arg0, %c0_i32 : i32, i32
  }
  func.func @transform_1(%arg0: i32) -> (i32, i32) {
    %c0_i32 = arith.constant 0 : i32
    %c0_i32_0 = arith.constant 0 : i32
    return %arg0, %c0_i32 : i32, i32
  }
  func.func @transform_2(%arg0: i32) -> (i32, i32) {
    %c0_i32 = arith.constant 0 : i32
    %c0_i32_0 = arith.constant 0 : i32
    return %arg0, %c0_i32 : i32, i32
  }
}

module attributes {stable_mosaic.version = 11 : i64} {
  func.func @_mask_loss_kernel(%arg0: i32, %arg1: memref<8x256xf32, #tpu.memory_space<vmem>>, %arg2: memref<8x256xbf16, #tpu.memory_space<vmem>>, %arg3: memref<8x1xf32, #tpu.memory_space<vmem>>, %arg4: memref<1x1xf32, #tpu.memory_space<vmem>>, %arg5: memref<1x1xf32, #tpu.memory_space<vmem>>, %arg6: memref<1x1xf32, #tpu.memory_space<vmem>>) attributes {dimension_semantics = [#tpu.dimension_semantics<parallel>], iteration_bounds = array<i64: 1>, scalar_prefetch = 0 : i64, scratch_operands = 0 : i64, tpu.core_type = #tpu.core_type<tc>, window_params = [{transform_indices = @transform_0, window_bounds = array<i64: 8, 256>}, {transform_indices = @transform_1, window_bounds = array<i64: 8, 256>}, {transform_indices = @transform_2, window_bounds = array<i64: 8, 1>}, {transform_indices = @transform_3, window_bounds = array<i64: 1, 1>}, {transform_indices = @transform_4, window_bounds = array<i64: 1, 1>}, {transform_indices = @transform_5, window_bounds = array<i64: 1, 1>}]} {
    %c0 = arith.constant 0 : index
    %c0_0 = arith.constant 0 : index
    %0 = vector.load %arg1[%c0, %c0_0] : memref<8x256xf32, #tpu.memory_space<vmem>>, vector<8x256xf32>
    %c0_1 = arith.constant 0 : index
    %c0_2 = arith.constant 0 : index
    %1 = vector.load %arg2[%c0_1, %c0_2] : memref<8x256xbf16, #tpu.memory_space<vmem>>, vector<8x256xbf16>
    %2 = arith.extf %1 : vector<8x256xbf16> to vector<8x256xf32>
    %c0_3 = arith.constant 0 : index
    %c0_4 = arith.constant 0 : index
    %3 = vector.load %arg3[%c0_3, %c0_4] : memref<8x1xf32, #tpu.memory_space<vmem>>, vector<8x1xf32>
    %c8_i32 = arith.constant 8 : i32
    %4 = arith.muli %arg0, %c8_i32 : i32
    %5 = tpu.iota {dimensions = array<i32: 0>} : vector<8x1xi32>
    %6 = vector.broadcast %4 : i32 to vector<8x1xi32>
    %7 = arith.addi %6, %5 : vector<8x1xi32>
    %c6_i32 = arith.constant 6 : i32
    %8 = vector.broadcast %c6_i32 : i32 to vector<8x1xi32>
    %9 = arith.cmpi slt, %7, %8 : vector<8x1xi32>
    %10 = arith.extui %9 : vector<8x1xi1> to vector<8x1xi32>
    %11 = arith.sitofp %10 : vector<8x1xi32> to vector<8x1xf32>
    %12 = math.absf %0 : vector<8x256xf32>
    %cst = arith.constant 0.000000e+00 : f32
    %13 = vector.broadcast %cst : f32 to vector<8x256xf32>
    %14 = arith.subf %13, %12 : vector<8x256xf32>
    %15 = math.exp %14 : vector<8x256xf32>
    %cst_5 = arith.constant 1.000000e+00 : f32
    %16 = vector.broadcast %cst_5 : f32 to vector<8x256xf32>
    %17 = arith.addf %16, %15 : vector<8x256xf32>
    %18 = tpu.reciprocal %17 {approx = true} : vector<8x256xf32> -> vector<8x256xf32>
    %cst_6 = arith.constant 0.000000e+00 : f32
    %19 = vector.broadcast %cst_6 : f32 to vector<8x256xf32>
    %20 = arith.cmpf oge, %0, %19 : vector<8x256xf32>
    %21 = arith.mulf %15, %18 : vector<8x256xf32>
    %22 = arith.select %20, %18, %21 : vector<8x256xi1>, vector<8x256xf32>
    %cst_7 = arith.constant -0.405465096 : f32
    %23 = vector.broadcast %cst_7 : f32 to vector<8x256xf32>
    %24 = arith.cmpf oge, %0, %23 : vector<8x256xf32>
    %25 = arith.extui %24 : vector<8x256xi1> to vector<8x256xi32>
    %26 = arith.sitofp %25 : vector<8x256xi32> to vector<8x256xf32>
    %cst_8 = arith.constant dense<0.000000e+00> : vector<8xf32>
    %27 = vector.multi_reduction <add>, %2, %cst_8 [1] : vector<8x256xf32> to vector<8xf32>
    %28 = vector.shape_cast %27 : vector<8xf32> to vector<8x1xf32>
    %cst_9 = arith.constant dense<0.000000e+00> : vector<8xf32>
    %29 = vector.multi_reduction <add>, %26, %cst_9 [1] : vector<8x256xf32> to vector<8xf32>
    %30 = vector.shape_cast %29 : vector<8xf32> to vector<8x1xf32>
    %31 = arith.mulf %26, %2 : vector<8x256xf32>
    %cst_10 = arith.constant dense<0.000000e+00> : vector<8xf32>
    %32 = vector.multi_reduction <add>, %31, %cst_10 [1] : vector<8x256xf32> to vector<8xf32>
    %33 = vector.shape_cast %32 : vector<8xf32> to vector<8x1xf32>
    %34 = arith.addf %28, %30 : vector<8x1xf32>
    %35 = arith.subf %34, %33 : vector<8x1xf32>
    %cst_11 = arith.constant 9.99999997E-7 : f32
    %36 = vector.broadcast %cst_11 : f32 to vector<8x1xf32>
    %37 = arith.addf %35, %36 : vector<8x1xf32>
    %38 = arith.divf %33, %37 : vector<8x1xf32>
    %39 = arith.mulf %22, %2 : vector<8x256xf32>
    %cst_12 = arith.constant dense<0.000000e+00> : vector<8xf32>
    %40 = vector.multi_reduction <add>, %39, %cst_12 [1] : vector<8x256xf32> to vector<8xf32>
    %41 = vector.shape_cast %40 : vector<8xf32> to vector<8x1xf32>
    %42 = arith.mulf %22, %22 : vector<8x256xf32>
    %cst_13 = arith.constant dense<0.000000e+00> : vector<8xf32>
    %43 = vector.multi_reduction <add>, %42, %cst_13 [1] : vector<8x256xf32> to vector<8xf32>
    %44 = vector.shape_cast %43 : vector<8xf32> to vector<8x1xf32>
    %cst_14 = arith.constant 2.000000e+00 : f32
    %45 = vector.broadcast %cst_14 : f32 to vector<8x1xf32>
    %46 = arith.mulf %45, %41 : vector<8x1xf32>
    %47 = arith.addf %44, %28 : vector<8x1xf32>
    %cst_15 = arith.constant 9.99999974E-5 : f32
    %48 = vector.broadcast %cst_15 : f32 to vector<8x1xf32>
    %49 = arith.addf %47, %48 : vector<8x1xf32>
    %50 = arith.divf %46, %49 : vector<8x1xf32>
    %cst_16 = arith.constant 1.000000e+00 : f32
    %51 = vector.broadcast %cst_16 : f32 to vector<8x1xf32>
    %52 = arith.subf %51, %50 : vector<8x1xf32>
    %cst_17 = arith.constant 0.000000e+00 : f32
    %53 = vector.broadcast %cst_17 : f32 to vector<8x256xf32>
    %54 = arith.maximumf %0, %53 : vector<8x256xf32>
    %55 = arith.mulf %0, %2 : vector<8x256xf32>
    %56 = arith.subf %54, %55 : vector<8x256xf32>
    %57 = math.log1p %15 : vector<8x256xf32>
    %58 = arith.addf %56, %57 : vector<8x256xf32>
    %cst_18 = arith.constant dense<0.000000e+00> : vector<8xf32>
    %59 = vector.multi_reduction <add>, %58, %cst_18 [1] : vector<8x256xf32> to vector<8xf32>
    %60 = vector.shape_cast %59 : vector<8xf32> to vector<8x1xf32>
    %cst_19 = arith.constant 0.000000e+00 : f32
    %61 = vector.broadcast %cst_19 : f32 to vector<8x1xf32>
    %62 = arith.maximumf %3, %61 : vector<8x1xf32>
    %63 = arith.mulf %3, %38 : vector<8x1xf32>
    %64 = arith.subf %62, %63 : vector<8x1xf32>
    %65 = math.absf %3 : vector<8x1xf32>
    %cst_20 = arith.constant 0.000000e+00 : f32
    %66 = vector.broadcast %cst_20 : f32 to vector<8x1xf32>
    %67 = arith.subf %66, %65 : vector<8x1xf32>
    %68 = math.exp %67 : vector<8x1xf32>
    %69 = math.log1p %68 : vector<8x1xf32>
    %70 = arith.addf %64, %69 : vector<8x1xf32>
    %cst_21 = arith.constant 0.000000e+00 : f32
    %71 = vector.broadcast %cst_21 : f32 to vector<1x1xf32>
    %72 = arith.mulf %52, %11 : vector<8x1xf32>
    %73 = vector.shape_cast %72 : vector<8x1xf32> to vector<1x8x1xf32>
    %cst_22 = arith.constant dense<0.000000e+00> : vector<1xf32>
    %74 = vector.multi_reduction <add>, %73, %cst_22 [1, 2] : vector<1x8x1xf32> to vector<1xf32>
    %75 = vector.shape_cast %74 : vector<1xf32> to vector<1x1x1xf32>
    %76 = vector.extract %75[0, 0, 0] : f32 from vector<1x1x1xf32>
    %77 = vector.broadcast %76 : f32 to vector<1x1xf32>
    %78 = arith.addf %71, %77 : vector<1x1xf32>
    %c0_23 = arith.constant 0 : index
    %c0_24 = arith.constant 0 : index
    %79 = vector.load %arg4[%c0_23, %c0_24] : memref<1x1xf32, #tpu.memory_space<vmem>>, vector<1x1xf32>
    tpu.vector_store %arg4[%c0_23, %c0_24], %78 {strides = array<i32>} : memref<1x1xf32, #tpu.memory_space<vmem>>, vector<1x1xf32>,
    %80 = arith.mulf %60, %11 : vector<8x1xf32>
    %81 = vector.shape_cast %80 : vector<8x1xf32> to vector<1x8x1xf32>
    %cst_25 = arith.constant dense<0.000000e+00> : vector<1xf32>
    %82 = vector.multi_reduction <add>, %81, %cst_25 [1, 2] : vector<1x8x1xf32> to vector<1xf32>
    %83 = vector.shape_cast %82 : vector<1xf32> to vector<1x1x1xf32>
    %84 = vector.extract %83[0, 0, 0] : f32 from vector<1x1x1xf32>
    %85 = vector.broadcast %84 : f32 to vector<1x1xf32>
    %86 = arith.addf %71, %85 : vector<1x1xf32>
    %c0_26 = arith.constant 0 : index
    %c0_27 = arith.constant 0 : index
    %87 = vector.load %arg5[%c0_26, %c0_27] : memref<1x1xf32, #tpu.memory_space<vmem>>, vector<1x1xf32>
    tpu.vector_store %arg5[%c0_26, %c0_27], %86 {strides = array<i32>} : memref<1x1xf32, #tpu.memory_space<vmem>>, vector<1x1xf32>,
    %88 = arith.mulf %70, %11 : vector<8x1xf32>
    %89 = vector.shape_cast %88 : vector<8x1xf32> to vector<1x8x1xf32>
    %cst_28 = arith.constant dense<0.000000e+00> : vector<1xf32>
    %90 = vector.multi_reduction <add>, %89, %cst_28 [1, 2] : vector<1x8x1xf32> to vector<1xf32>
    %91 = vector.shape_cast %90 : vector<1xf32> to vector<1x1x1xf32>
    %92 = vector.extract %91[0, 0, 0] : f32 from vector<1x1x1xf32>
    %93 = vector.broadcast %92 : f32 to vector<1x1xf32>
    %94 = arith.addf %71, %93 : vector<1x1xf32>
    %c0_29 = arith.constant 0 : index
    %c0_30 = arith.constant 0 : index
    %95 = vector.load %arg6[%c0_29, %c0_30] : memref<1x1xf32, #tpu.memory_space<vmem>>, vector<1x1xf32>
    tpu.vector_store %arg6[%c0_29, %c0_30], %94 {strides = array<i32>} : memref<1x1xf32, #tpu.memory_space<vmem>>, vector<1x1xf32>,
    return
  }
  func.func @transform_0(%arg0: i32) -> (i32, i32) {
    %c0_i32 = arith.constant 0 : i32
    %c0_i32_0 = arith.constant 0 : i32
    return %arg0, %c0_i32 : i32, i32
  }
  func.func @transform_1(%arg0: i32) -> (i32, i32) {
    %c0_i32 = arith.constant 0 : i32
    %c0_i32_0 = arith.constant 0 : i32
    return %arg0, %c0_i32 : i32, i32
  }
  func.func @transform_2(%arg0: i32) -> (i32, i32) {
    %c0_i32 = arith.constant 0 : i32
    %c0_i32_0 = arith.constant 0 : i32
    return %arg0, %c0_i32 : i32, i32
  }
  func.func @transform_3(%arg0: i32) -> (i32, i32) {
    %c0_i32 = arith.constant 0 : i32
    %c0_i32_0 = arith.constant 0 : i32
    return %arg0, %c0_i32 : i32, i32
  }
  func.func @transform_4(%arg0: i32) -> (i32, i32) {
    %c0_i32 = arith.constant 0 : i32
    %c0_i32_0 = arith.constant 0 : i32
    return %arg0, %c0_i32 : i32, i32
  }
  func.func @transform_5(%arg0: i32) -> (i32, i32) {
    %c0_i32 = arith.constant 0 : i32
    %c0_i32_0 = arith.constant 0 : i32
    return %arg0, %c0_i32 : i32, i32
  }
}

</mosaic_0001>

<bundles_post_ra>
// kernel: _loss_sums.2
= control target key start
LH: loop header
LB: loop body
LE: loop exit
PB: predicated region body
PF: predicated region fallthrough
CT: control target
= control target key end

     0   :  { %s252_s0 = inlined_call_operand.vmem [shape: f32[16,4], index: 0, kind: input, shape index: {}]   ;;  %s253_s1 = inlined_call_operand.vmem [shape: s32[16,1], index: 1, kind: input, shape index: {}]   ;;  %s254_s2 = inlined_call_operand.hbm [shape: f32[1,1], index: 2, kind: output, shape index: {}]  }
   0x1   :  { %v14_v0 = vld [vmem:[%s253_s1] sm:$0xff]  ;;  %v15_v1 = vld [vmem:[%s253_s1 + $0x8] sm:$0xff] }
   0x2   :  { %7 = vsyncpa [#allocation3], 0  ;;  %v203_v2 = vmov 0   ;;  %vm30_vm0 = vcmp.ge.s32.totalorder %v14_v0, 0  ;;  %vm31_vm1 = vcmp.ge.s32.totalorder %v15_v1, 0  ;;  %v204_v3 = vmov 0.0  }
   0x3   :  { %158 = vset.pattern.permute.xlu0 %v203_v2  ;;  %159 = vset.pattern.permute.xlu1 %v203_v2  ;;  %v151_v4 = vsel %vm30_vm0, 1.0, %v204_v3  ;;  %v152_v5 = vsel %vm31_vm1, 1.0, %v204_v3  ;;  %v12_v7 = vld [vmem:[%s252_s0] sm:$0xff]  ;;  %v235_v9 = vld [vmem:[%s252_s0 + $0x8] sm:$0xff]  ;;  %v16_v21 = vlaneseq  ;;  %vm116_vm8 = vcmask 31744   ;;  %s205_s0 = smov [#allocation2]  }
   0x4   :  { %19 = vperm.xlu0 %158, %v14_v0   ;;  %v160_v6 = vpack.i.bf16 %v152_v5, %v151_v4  ;;  %v36_v8 = vand.u32 2147483647, %v12_v7  ;;  %v37_v11 = vand.u32 2147483647, %v235_v9  ;;  %vm48_vm2 = vcmp.ge.f32.partialorder %v12_v7, 0.0  ;;  %s138_s16 = sshll.u32 %s205_s0, 4  ;;  %s139_s16 = int_to_ptr.vmem [resolvable:$true] %s138_s16 }
   0x5   :  { %v17_v27 = vand.u32 127, %v16_v21  ;;  %v54_v35 = vmax.f32 %v12_v7, 0.0  ;;  %vm49_vm5 = vcmp.ge.f32.partialorder %v235_v9, 0.0  ;;  %v55_v54 = vmax.f32 %v235_v9, 0.0  ;;  %s140_s19 = sshll.u32 %s254_s2, 4  ;;  %s141_s19 = int_to_ptr.hbm [resolvable:$true] %s140_s19 }
   0x6   :  { %161 = vperm.xlu1 %159, %v160_v6   ;;  %v38_v10 = vsub.f32 0.0, %v36_v8  ;;  %v39_v13 = vsub.f32 0.0, %v37_v11  ;;  %vm131_vm9 = vcmask 0  }
   0x8   :  { %v40_v12 = vmul.f32 1.442695, %v38_v10  ;;  %v42_v14 = vmul.f32 1.442695, %v39_v13 }
   0xa   :  { %165 = vpow2.f32 %v40_v12 }
   0xb   :  { %167 = vpow2.f32 %v42_v14 }
   0xc   :  { %22 = vperm.xlu0 %158, %v15_v1  }
  0x10   :  { %v166_v15 = vpop.eup %165 }
  0x11   :  { %v44_v16 = vadd.f32 1.0, %v166_v15  ;;  %v168_v17 = vpop.eup %167  ;;  %v63_v20 = vmul.f32 -0.5, %v166_v15  ;;  %v66_v25 = vand.u32 2147483647, %v166_v15 }
  0x12   :  { %v45_v18 = vadd.f32 1.0, %v168_v17  ;;  %v72_v34 = vmul.f32 -0.5, %v168_v17  ;;  %v75_v44 = vand.u32 2147483647, %v168_v17 }
  0x13   :  { %169 = vrcp.f32 %v44_v16  ;;  %v64_v23 = vadd.f32 1.0, %v63_v20  ;;  %vm238_vm3 = vcmp.lt.f32.partialorder %v66_v25, 0.0004427343 }
  0x14   :  { %171 = vlog2.f32 %v44_v16  ;;  %v73_v43 = vadd.f32 1.0, %v72_v34  ;;  %vm76_vm7 = vcmp.lt.f32.partialorder %v75_v44, 0.0004427343 }
  0x15   :  { %173 = vrcp.f32 %v45_v18  ;;  %v65_v30 = vmul.f32 %v166_v15, %v64_v23 }
  0x16   :  { %175 = vlog2.f32 %v45_v18  ;;  %v74_v56 = vmul.f32 %v168_v17, %v73_v43 }
  0x19   :  { %v170_v19 = vpop.eup %169 }
  0x1a   :  { %v50_v22 = vmul.f32 %v170_v19, %v166_v15  ;;  %v172_v24 = vpop.eup %171 }
  0x1b   :  { %v174_v26 = vpop.eup %173  ;;  %v62_v29 = vmul.f32 0.6931472, %v172_v24 }
  0x1c   :  { %v52_v28 = vsel %vm48_vm2, %v170_v19, %v50_v22  ;;  %v51_v33 = vmul.f32 %v174_v26, %v168_v17  ;;  %v176_v45 = vpop.eup %175 }
  0x1d   :  { %v82_v36 = vsub.f32 1.0, %v52_v28  ;;  %v68_v39 = vsel %vm238_vm3, %v65_v30, %v62_v29  ;;  %v71_v55 = vmul.f32 0.6931472, %v176_v45 }
  0x1e   :  { %v53_v42 = vsel %vm49_vm5, %v174_v26, %v51_v33 }
  0x1f   :  { %v83_v57 = vsub.f32 1.0, %v53_v42  ;;  %v77_v63 = vsel %vm76_vm7, %v74_v56, %v71_v55 }
  0x76   :  { %v20_v31 = vpop.permute.xlu0 %19 }
  0x77   :  { %vm24_vm4 = vcmp.eq.s32.totalorder %v17_v27, %v20_v31 }
  0x78   :  { %v149_v37 = vsel %vm24_vm4, 1.0, %v204_v3 }
  0x79   :  { %v56_v38 = vmul.f32 %v149_v37, %v12_v7  ;;  %v84_v40 = vsub.f32 1.0, %v149_v37  ;;  %v80_v41 = vmul.f32 %v149_v37, %v52_v28  ;;  %v92_v48 = vmul.f32 0.25, %v149_v37  ;;  %v162_v7 = vpop.permute.xlu1 %161 }
  0x7a   :  { %v163_v13 = vunpack.i.l.bf16 %v162_v7  ;;  %v164_v16 = vunpack.i.h.bf16 %v162_v7 }
  0x7b   :  { %v58_v46 = vsub.f32 %v54_v35, %v56_v38  ;;  %v86_v47 = vmul.f32 %v84_v40, %v82_v36  ;;  %v94_v49 = vmul.f32 0.75, %v84_v40 }
  0x7d   :  { %v78_v50 = vadd.f32 %v68_v39, %v58_v46  ;;  %v88_v51 = vadd.f32 %v86_v47, %v80_v41  ;;  %v96_v52 = vadd.f32 %v94_v49, %v92_v48 }
  0x7e   :  { %v23_v53 = vpop.permute.xlu0 %22 }
  0x7f   :  { %v98_v58 = vmul.f32 %v96_v52, %v78_v50  ;;  %vm25_vm6 = vcmp.eq.s32.totalorder %v17_v27, %v23_v53  ;;  %v90_v59 = vsub.f32 1.0, %v88_v51 }
  0x80   :  { %v150_v60 = vsel %vm25_vm6, 1.0, %v204_v3 }
  0x81   :  { %v57_v61 = vmul.f32 %v150_v60, %v235_v9  ;;  %v85_v62 = vsub.f32 1.0, %v150_v60  ;;  %v81_v0 = vmul.f32 %v150_v60, %v53_v42  ;;  %v93_v1 = vmul.f32 0.25, %v150_v60 }
  0x82   :  { %v100_v6 = vmul.f32 %v98_v58, %v90_v59 }
  0x83   :  { %v59_v2 = vsub.f32 %v55_v54, %v57_v61  ;;  %v87_v4 = vmul.f32 %v85_v62, %v83_v57  ;;  %v95_v5 = vmul.f32 0.75, %v85_v62 }
  0x84   :  { %v102_v15 = vmul.f32 %v100_v6, %v90_v59 }
  0x85   :  { %v79_v8 = vadd.f32 %v77_v63, %v59_v2  ;;  %v89_v10 = vadd.f32 %v87_v4, %v81_v0  ;;  %v97_v11 = vadd.f32 %v95_v5, %v93_v1 }
  0x86   :  { %v114_v9 = vmul.f32 %v163_v13, %v102_v15 }
  0x87   :  { %v99_v12 = vmul.f32 %v97_v11, %v79_v8  ;;  %v91_v14 = vsub.f32 1.0, %v89_v10 }
  0x88   :  { %v117_v19 = vsel %vm116_vm8, %v114_v9, 0.0 }
  0x89   :  { %v101_v3 = vmul.f32 %v99_v12, %v91_v14 }
  0x8b   :  { %v103_v17 = vmul.f32 %v101_v3, %v91_v14 }
  0x8d   :  { %v115_v18 = vmul.f32 %v164_v16, %v103_v17 }
  0x8f   :  { %v118_v20 = vsel %vm116_vm8, %v115_v18, 0.0 }
  0x90   :  { %v119_v21 = vadd.f32 %v118_v20, %v117_v19 }
  0x92   :  { %120 = vadd.xlane.f32.xlu1 %v119_v21 }
 0x105   :  { %v121_v22 = vpop.xlane.xlu1 %120 }
 0x106   :  { %v122_v23 = vrot.slane %v121_v22, 4 }
 0x108   :  { %v123_v24 = vadd.f32 %v122_v23, %v121_v22 }
 0x10a   :  { %v124_v25 = vrot.slane %v123_v24, 2 }
 0x10c   :  { %v125_v26 = vadd.f32 %v124_v25, %v123_v24 }
 0x10e   :  { %v126_v27 = vrot.slane %v125_v26, 1 }
 0x110   :  { %v127_v28 = vadd.f32 %v126_v27, %v125_v26 }
 0x112   :  { %153 = vpush %v127_v28 }
 0x143   :  { %s154_s20 = spop %153 }
 0x144   :  { %v129_v29 = vstv %s154_s20 }
 0x145   :  { %132 = vst.msk [vmem:[#allocation2] sm:$0x1] %vm131_vm9, %v129_v29 }
 0x146   :  { %143 = dma.vmem_to_hbm [thread:$0]  %s139_s16, 16, %s141_s19, [#allocation3]  }
 0x147   :  { %201 = dma.done.wait [#allocation3], 16  }
 0x148   :  { %202 = vsyncadd [#allocation3], 4294967280 }
 0x149   :  { %148 = vsyncpa [#allocation3], 1 }

// kernel: _loss_sums.3
= control target key start
LH: loop header
LB: loop body
LE: loop exit
PB: predicated region body
PF: predicated region fallthrough
CT: control target
= control target key end

     0   :  { %11 = vsyncpa [#allocation3], 0  ;;  %s450_s0 = inlined_call_operand.vmem [shape: f32[8,256], index: 0, kind: input, shape index: {}]   ;;  %s451_s1 = inlined_call_operand.vmem [shape: bf16[8,256], index: 1, kind: input, shape index: {}]   ;;  %s452_s2 = inlined_call_operand.vmem [shape: f32[8,1], index: 2, kind: input, shape index: {}]   ;;  %s453_s3 = inlined_call_operand.hbm [shape: f32[1,1], index: 3, kind: output, shape index: {0}]   ;;  %s454_s4 = inlined_call_operand.hbm [shape: f32[1,1], index: 4, kind: output, shape index: {1}]   ;;  %s455_s5 = inlined_call_operand.hbm [shape: f32[1,1], index: 5, kind: output, shape index: {2}]  }
   0x1   :  { %v21_v0 = vld [vmem:[%s451_s1] sm:$0xff]  ;;  %v406_v2 = vld [vmem:[%s450_s0 + $0x8] sm:$0xff] }
   0x2   :  { %v401_v1 = vld [vmem:[%s450_s0] sm:$0xff]  ;;  %v22_v3 = vunpack.c.l.bf16 %v21_v0  ;;  %v23_v4 = vunpack.c.h.bf16 %v21_v0  ;;  %v34_v5 = vand.u32 2147483647, %v406_v2 }
   0x3   :  { %vm51_vm0 = vcmp.ge.f32.partialorder %v401_v1, -0.4054651 }
   0x4   :  { %12 = vsyncpa [#allocation5], 0  ;;  %vm52_vm1 = vcmp.ge.f32.partialorder %v406_v2, -0.4054651  ;;  %v361_v6 = vmov 0.0   ;;  %v57_v9 = vadd.f32 %v23_v4, %v22_v3  ;;  %v36_v10 = vsub.f32 0.0, %v34_v5 }
   0x5   :  { %v253_v7 = vsel %vm51_vm0, 1.0, %v361_v6  ;;  %v33_v8 = vand.u32 2147483647, %v401_v1  ;;  %v254_v11 = vsel %vm52_vm1, 1.0, %v361_v6  ;;  %vm45_vm2 = vcmp.ge.f32.partialorder %v401_v1, 0.0  ;;  %v24_v60 = vld [vmem:[%s452_s2] sm:$0xff] }
   0x6   :  { %v63_v12 = vmul.f32 %v253_v7, %v22_v3  ;;  %v64_v14 = vmul.f32 %v254_v11, %v23_v4  ;;  %58 = vadd.xlane.f32.xlu0 %v57_v9  ;;  %v39_v15 = vmul.f32 1.442695, %v36_v10  ;;  %v60_v18 = vadd.f32 %v254_v11, %v253_v7  ;;  %s362_s2 = smov [#allocation4]   ;;  %s223_s27 = sshll.u32 %s454_s4, 4  ;;  %s224_s27 = int_to_ptr.hbm [resolvable:$true] %s223_s27 }
   0x7   :  { %v35_v13 = vsub.f32 0.0, %v33_v8  ;;  %vm46_vm3 = vcmp.ge.f32.partialorder %v406_v2, 0.0  ;;  %v115_v30 = vmax.f32 %v401_v1, 0.0  ;;  %v116_v33 = vmax.f32 %v406_v2, 0.0  ;;  %s221_s24 = sshll.u32 %s362_s2, 4  ;;  %s212_s30 = sshll.u32 %s453_s3, 4  ;;  %s222_s24 = int_to_ptr.vmem [resolvable:$true] %s221_s24  ;;  %s213_s30 = int_to_ptr.hbm [resolvable:$true] %s212_s30 }
   0x8   :  { %v65_v17 = vadd.f32 %v64_v14, %v63_v12  ;;  %265 = vpow2.f32 %v39_v15  ;;  %v117_v34 = vmul.f32 %v22_v3, %v401_v1  ;;  %v118_v35 = vmul.f32 %v23_v4, %v406_v2  ;;  %s363_s6 = smov [#allocation2]   ;;  %s364_s8 = smov [#allocation6]  }
   0x9   :  { %v37_v16 = vmul.f32 1.442695, %v35_v13  ;;  %v147_v61 = vand.u32 2147483647, %v24_v60  ;;  %v26_v11 = vlaneseq  ;;  %vm162_vm12 = vcmask 7168   ;;  %s210_s7 = sshll.u32 %s363_s6, 4  ;;  %s211_s7 = int_to_ptr.vmem [resolvable:$true] %s210_s7 }
   0xa   :  { %66 = vadd.xlane.f32.xlu1 %v65_v17  ;;  %v119_v51 = vsub.f32 %v115_v30, %v117_v34  ;;  %v120_v52 = vsub.f32 %v116_v33, %v118_v35  ;;  %s232_s9 = sshll.u32 %s364_s8, 4  ;;  %vm175_vm1 = vcmask 0   ;;  %s234_s12 = sshll.u32 %s455_s5, 4  ;;  %s233_s9 = int_to_ptr.vmem [resolvable:$true] %s232_s9  ;;  %s235_s12 = int_to_ptr.hbm [resolvable:$true] %s234_s12 }
   0xb   :  { %267 = vpow2.f32 %v37_v16  ;;  %v148_v63 = vsub.f32 0.0, %v147_v61 }
   0xd   :  { %v149_v0 = vmul.f32 1.442695, %v148_v63 }
   0xe   :  { %v266_v19 = vpop.eup %265  ;;  %61 = vadd.xlane.f32.xlu0 %v60_v18 }
   0xf   :  { %v42_v21 = vadd.f32 1.0, %v266_v19  ;;  %v133_v24 = vmul.f32 -0.5, %v266_v19  ;;  %v136_v28 = vand.u32 2147483647, %v266_v19 }
  0x11   :  { %v268_v20 = vpop.eup %267  ;;  %269 = vrcp.f32 %v42_v21  ;;  %v134_v26 = vadd.f32 1.0, %v133_v24  ;;  %vm424_vm5 = vcmp.lt.f32.partialorder %v136_v28, 0.0004427343 }
  0x12   :  { %v41_v22 = vadd.f32 1.0, %v268_v20  ;;  %v124_v23 = vmul.f32 -0.5, %v268_v20  ;;  %v127_v27 = vand.u32 2147483647, %v268_v20 }
  0x13   :  { %v135_v39 = vmul.f32 %v266_v19, %v134_v26 }
  0x14   :  { %271 = vrcp.f32 %v41_v22  ;;  %v125_v25 = vadd.f32 1.0, %v124_v23  ;;  %vm420_vm4 = vcmp.lt.f32.partialorder %v127_v27, 0.0004427343 }
  0x15   :  { %273 = vlog2.f32 %v41_v22 }
  0x16   :  { %275 = vlog2.f32 %v42_v21  ;;  %v126_v38 = vmul.f32 %v268_v20, %v125_v25  ;;  %v27_v21 = vshrl.u32 %v26_v11, 7 }
  0x17   :  { %v270_v29 = vpop.eup %269  ;;  %277 = vpow2.f32 %v149_v0 }
  0x18   :  { %v48_v32 = vmul.f32 %v270_v29, %v266_v19  ;;  %vm30_vm10 = vcmp.lt.s32.totalorder %v27_v21, 6 }
  0x19   :  { %v252_v34 = vsel %vm30_vm10, 1.0, %v361_v6 }
  0x1a   :  { %v272_v31 = vpop.eup %271  ;;  %v50_v41 = vsel %vm46_vm3, %v270_v29, %v48_v32 }
  0x1b   :  { %v274_v36 = vpop.eup %273  ;;  %v47_v37 = vmul.f32 %v272_v31, %v268_v20  ;;  %v92_v46 = vmul.f32 %v50_v41, %v50_v41  ;;  %v87_v47 = vmul.f32 %v50_v41, %v23_v4 }
  0x1c   :  { %v276_v40 = vpop.eup %275  ;;  %v123_v42 = vmul.f32 0.6931472, %v274_v36 }
  0x1d   :  { %v49_v45 = vsel %vm45_vm2, %v272_v31, %v47_v37  ;;  %v132_v48 = vmul.f32 0.6931472, %v276_v40  ;;  %v278_v7 = vpop.eup %277  ;;  %v144_v31 = vmax.f32 %v24_v60, 0.0 }
  0x1e   :  { %v91_v49 = vmul.f32 %v49_v45, %v49_v45  ;;  %v86_v50 = vmul.f32 %v49_v45, %v22_v3  ;;  %v129_v53 = vsel %vm420_vm4, %v126_v38, %v123_v42  ;;  %v151_v8 = vadd.f32 1.0, %v278_v7 }
  0x1f   :  { %v138_v54 = vsel %vm424_vm5, %v135_v39, %v132_v48  ;;  %v139_v57 = vadd.f32 %v129_v53, %v119_v51  ;;  %v154_v12 = vmul.f32 -0.5, %v278_v7  ;;  %v157_v24 = vand.u32 2147483647, %v278_v7 }
  0x20   :  { %v93_v55 = vadd.f32 %v92_v46, %v91_v49  ;;  %v88_v56 = vadd.f32 %v87_v47, %v86_v50  ;;  %v140_v58 = vadd.f32 %v138_v54, %v120_v52 }
  0x21   :  { %v155_v22 = vadd.f32 1.0, %v154_v12  ;;  %vm158_vm11 = vcmp.lt.f32.partialorder %v157_v24, 0.0004427343 }
  0x22   :  { %94 = vadd.xlane.f32.xlu1 %v93_v55  ;;  %89 = vadd.xlane.f32.xlu2 %v88_v56  ;;  %v141_v59 = vadd.f32 %v140_v58, %v139_v57 }
  0x23   :  { %v156_v30 = vmul.f32 %v278_v7, %v155_v22 }
  0x2a   :  { %142 = vadd.xlane.f32.xlu2 %v141_v59 }
  0x79   :  { %v59_v62 = vpop.xlane.xlu0 %58 }
  0x7d   :  { %v67_v2 = vpop.xlane.xlu1 %66 }
  0x81   :  { %v62_v1 = vpop.xlane.xlu0 %61 }
  0x82   :  { %v68_v3 = vadd.f32 %v62_v1, %v59_v62 }
  0x84   :  { %v69_v4 = vsub.f32 %v68_v3, %v67_v2 }
  0x86   :  { %v70_v5 = vadd.f32 1e-06, %v69_v4 }
  0x88   :  { %279 = vrcp.f32 %v70_v5  ;;  %v82_v14 = vand.u32 2147483648, %v70_v5  ;;  %v80_v16 = vand.u32 2147483647, %v70_v5  ;;  %vm76_vm7 = vweird.f32 %v70_v5 }
  0x89   :  { %281 = vlog2.f32 %v151_v8 }
  0x8a   :  { %v83_v25 = vor.u32 1.1754944e-38, %v82_v14  ;;  %vm81_vm9 = vcmp.eq.f32.partialorder %v80_v16, 8.507059e+37 }
  0x8e   :  { %v280_v9 = vpop.eup %279 }
  0x8f   :  { %v72_v10 = vmul.f32 %v280_v9, %v70_v5  ;;  %vm77_vm6 = vweird.f32 %v280_v9  ;;  %v282_v19 = vpop.eup %281 }
  0x90   :  { %vm78_vm8 = vmor %vm76_vm7, %vm77_vm6  ;;  %v153_v28 = vmul.f32 0.6931472, %v282_v19 }
  0x91   :  { %v73_v13 = vsub.f32 1.0, %v72_v10 }
  0x92   :  { %v159_v36 = vsel %vm158_vm11, %v156_v30, %v153_v28 }
  0x93   :  { %v74_v15 = vmul.f32 %v280_v9, %v73_v13 }
  0x95   :  { %v95_v17 = vpop.xlane.xlu1 %94  ;;  %v90_v18 = vpop.xlane.xlu2 %89  ;;  %v75_v23 = vadd.f32 %v280_v9, %v74_v15 }
  0x96   :  { %v97_v20 = vadd.f32 %v95_v17, %v59_v62  ;;  %v96_v51 = vmul.f32 2.0, %v90_v18 }
  0x97   :  { %v79_v27 = vsel %vm78_vm8, %v280_v9, %v75_v23 }
  0x98   :  { %v98_v26 = vadd.f32 0.0001, %v97_v20  ;;  %v84_v29 = vsel %vm81_vm9, %v83_v25, %v79_v27 }
  0x99   :  { %v85_v32 = vmul.f32 %v84_v29, %v67_v2 }
  0x9a   :  { %283 = vrcp.f32 %v98_v26  ;;  %v110_v45 = vand.u32 2147483648, %v98_v26  ;;  %v108_v47 = vand.u32 2147483647, %v98_v26  ;;  %vm104_vm14 = vweird.f32 %v98_v26 }
  0x9b   :  { %v145_v33 = vmul.f32 %v85_v32, %v24_v60 }
  0x9c   :  { %v111_v49 = vor.u32 1.1754944e-38, %v110_v45  ;;  %vm109_vm0 = vcmp.eq.f32.partialorder %v108_v47, 8.507059e+37 }
  0x9d   :  { %v143_v35 = vpop.xlane.xlu2 %142  ;;  %v146_v38 = vsub.f32 %v144_v31, %v145_v33 }
  0x9e   :  { %v177_v37 = vmul.f32 %v252_v34, %v143_v35 }
  0x9f   :  { %v160_v42 = vadd.f32 %v159_v36, %v146_v38 }
  0xa0   :  { %v284_v39 = vpop.eup %283  ;;  %v178_v40 = vsel %vm162_vm12, %v177_v37, 0.0 }
  0xa1   :  { %v100_v41 = vmul.f32 %v284_v39, %v98_v26  ;;  %179 = vadd.xlane.f32.xlu1 %v178_v40  ;;  %v191_v44 = vmul.f32 %v252_v34, %v160_v42  ;;  %vm105_vm13 = vweird.f32 %v284_v39 }
  0xa2   :  { %vm106_vm15 = vmor %vm104_vm14, %vm105_vm13 }
  0xa3   :  { %v101_v43 = vsub.f32 1.0, %v100_v41  ;;  %v192_v48 = vsel %vm162_vm12, %v191_v44, 0.0 }
  0xa4   :  { %193 = vadd.xlane.f32.xlu2 %v192_v48 }
  0xa5   :  { %v102_v46 = vmul.f32 %v284_v39, %v101_v43 }
  0xa7   :  { %v103_v6 = vadd.f32 %v284_v39, %v102_v46 }
  0xa9   :  { %v107_v50 = vsel %vm106_vm15, %v284_v39, %v103_v6 }
  0xaa   :  { %v112_v52 = vsel %vm109_vm0, %v111_v49, %v107_v50 }
  0xab   :  { %v113_v53 = vmul.f32 %v112_v52, %v96_v51 }
  0xad   :  { %v114_v54 = vsub.f32 1.0, %v113_v53 }
  0xaf   :  { %v161_v55 = vmul.f32 %v252_v34, %v114_v54 }
  0xb1   :  { %v163_v56 = vsel %vm162_vm12, %v161_v55, 0.0 }
  0xb2   :  { %164 = vadd.xlane.f32.xlu0 %v163_v56 }
 0x114   :  { %v180_v57 = vpop.xlane.xlu1 %179 }
 0x115   :  { %v181_v59 = vrot.slane %v180_v57, 4 }
 0x117   :  { %v194_v58 = vpop.xlane.xlu2 %193  ;;  %v182_v61 = vadd.f32 %v181_v59, %v180_v57 }
 0x118   :  { %v195_v60 = vrot.slane %v194_v58, 4 }
 0x119   :  { %v183_v63 = vrot.slane %v182_v61, 2 }
 0x11a   :  { %v196_v62 = vadd.f32 %v195_v60, %v194_v58 }
 0x11b   :  { %v184_v4 = vadd.f32 %v183_v63, %v182_v61 }
 0x11c   :  { %v197_v1 = vrot.slane %v196_v62, 2 }
 0x11d   :  { %v185_v9 = vrot.slane %v184_v4, 1 }
 0x11e   :  { %v198_v5 = vadd.f32 %v197_v1, %v196_v62 }
 0x11f   :  { %v186_v13 = vadd.f32 %v185_v9, %v184_v4 }
 0x120   :  { %v199_v11 = vrot.slane %v198_v5, 1 }
 0x122   :  { %v200_v14 = vadd.f32 %v199_v11, %v198_v5 }
 0x125   :  { %v165_v0 = vpop.xlane.xlu0 %164 }
 0x126   :  { %v166_v2 = vrot.slane %v165_v0, 4 }
 0x128   :  { %v167_v3 = vadd.f32 %v166_v2, %v165_v0 }
 0x12a   :  { %v168_v7 = vrot.slane %v167_v3, 2 }
 0x12c   :  { %v169_v8 = vadd.f32 %v168_v7, %v167_v3 }
 0x12e   :  { %v170_v10 = vrot.slane %v169_v8, 1 }
 0x130   :  { %v171_v12 = vadd.f32 %v170_v10, %v169_v8 }
 0x132   :  { %255 = vpush %v171_v12 }
 0x133   :  { %257 = vpush %v186_v13 }
 0x134   :  { %259 = vpush %v200_v14 }
 0x163   :  { %s256_s13 = spop %255 }
 0x164   :  { %v173_v15 = vstv %s256_s13  ;;  %s258_s4 = spop %257 }
 0x165   :  { %176 = vst.msk [vmem:[#allocation2] sm:$0x1] %vm175_vm1, %v173_v15  ;;  %v188_v16 = vstv %s258_s4  ;;  %s260_s3 = spop %259 }
 0x166   :  { %190 = vst.msk [vmem:[#allocation4] sm:$0x1] %vm175_vm1, %v188_v16  ;;  %v202_v17 = vstv %s260_s3  ;;  %215 = dma.vmem_to_hbm [thread:$0]  %s211_s7, 16, %s213_s30, [#allocation3]  }
 0x167   :  { %204 = vst.msk [vmem:[#allocation6] sm:$0x1] %vm175_vm1, %v202_v17  ;;  %226 = dma.vmem_to_hbm [thread:$0]  %s222_s24, 16, %s224_s27, [#allocation5]  }
 0x168   :  { %237 = dma.vmem_to_hbm [thread:$0]  %s233_s9, 16, %s235_s12, [#allocation5]  }
 0x169   :  { %357 = dma.done.wait [#allocation3], 16  }
 0x16a   :  { %358 = vsyncadd [#allocation3], 4294967280 }
 0x16b   :  { %359 = dma.done.wait [#allocation5], 32  }
 0x16c   :  { %360 = vsyncadd [#allocation5], 4294967264 }
 0x16d   :  { %250 = vsyncpa [#allocation3], 1 }
 0x16e   :  { %251 = vsyncpa [#allocation5], 1 }

</bundles_post_ra>
